<compile_context>
chip_gen: v7x
topology: tpu7x:2x2x1
jax: 0.10.0
libtpu: 0.0.40
codegen_flags: <defaults>
</compile_context>

<pallas_src>
import math
import jax
import jax.numpy as jnp
from jax.experimental import pallas as pl
from jax.experimental.pallas import tpu as pltpu

K_IN = 28 * 28          # 784
K_PAD = 896             # 7 * 128 (padded contraction dim)
N_HID = 256
N_OUT = 10
N_OUT_PAD = 128         # lane-dense padded output width


def mlp_kernel(x_ref, w1_ref, b1_ref, w2_ref, b2_ref, o_ref):
    # x_ref:  (TB, 896)  bf16       w1_ref: (896, 256) bf16
    # b1_ref: (1, 256)   f32        w2_ref: (256, 128) bf16
    # b2_ref: (1, 128)   f32        o_ref:  (TB, 128)  f32
    h = jnp.dot(x_ref[...], w1_ref[...], preferred_element_type=jnp.float32)
    h = jnp.maximum(h + b1_ref[...], 0.0)          # bias + ReLU in f32 accumulator
    h = h.astype(jnp.bfloat16)                     # single cast, feed MXU bf16
    o = jnp.dot(h, w2_ref[...], preferred_element_type=jnp.float32)
    o_ref[...] = o + b2_ref[...]


def mlp_forward(x_nchw, w1, b1, w2, b2, *, block_b=512):
    """x_nchw: (B, 1, 28, 28) f32; w1: (784,256), b1: (1,256), w2: (256,10), b2: (1,10)."""
    B = x_nchw.shape[0]
    x2d = x_nchw.reshape(B, K_IN)                  # == x.view(-1, 28*28)

    # Batch tile: multiple of 128, capped by block_b; pad batch up to a tile multiple.
    TB = block_b if B >= block_b else 128
    n_tiles = pl.cdiv(B, TB)
    B_pad = n_tiles * TB

    # Pad + cast matmul operands (zero-fill so padding contributes nothing).
    x_p = jnp.pad(x2d.astype(jnp.bfloat16), ((0, B_pad - B), (0, K_PAD - K_IN)))
    w1_p = jnp.pad(w1, ((0, K_PAD - K_IN), (0, 0))).astype(jnp.bfloat16)
    w2_p = jnp.pad(w2, ((0, 0), (0, N_OUT_PAD - N_OUT))).astype(jnp.bfloat16)
    b1_f = b1.astype(jnp.float32)
    b2_p = jnp.pad(b2.astype(jnp.float32), ((0, 0), (0, N_OUT_PAD - N_OUT)))

    flops = 2 * B_pad * (K_PAD * N_HID + N_HID * N_OUT_PAD)
    bytes_accessed = (x_p.size * 2 + w1_p.size * 2 + w2_p.size * 2
                      + b1_f.size * 4 + b2_p.size * 4 + B_pad * N_OUT_PAD * 4)

    out = pl.pallas_call(
        mlp_kernel,
        out_shape=jax.ShapeDtypeStruct((B_pad, N_OUT_PAD), jnp.float32),
        grid=(n_tiles,),
        in_specs=[
            pl.BlockSpec((TB, K_PAD), lambda i: (i, 0)),        # x tile streams per step
            pl.BlockSpec((K_PAD, N_HID), lambda i: (0, 0)),     # w1 resident
            pl.BlockSpec((1, N_HID), lambda i: (0, 0)),         # b1 resident
            pl.BlockSpec((N_HID, N_OUT_PAD), lambda i: (0, 0)), # w2 resident
            pl.BlockSpec((1, N_OUT_PAD), lambda i: (0, 0)),     # b2 resident
        ],
        out_specs=pl.BlockSpec((TB, N_OUT_PAD), lambda i: (i, 0)),
        compiler_params=pltpu.CompilerParams(
            dimension_semantics=("parallel",)),
        cost_estimate=pl.CostEstimate(
            flops=flops, transcendentals=0, bytes_accessed=bytes_accessed),
    )(x_p, w1_p, b1_f, w2_p, b2_p)

    return out[:B, :N_OUT]


def init_params(key):
    # Deterministic init mimicking nn.Linear defaults:
    # weight, bias ~ U(-1/sqrt(fan_in), 1/sqrt(fan_in)); stored as (in, out).
    k1, k2, k3, k4 = jax.random.split(key, 4)
    bound1 = 1.0 / math.sqrt(K_IN)
    w1 = jax.random.uniform(k1, (K_IN, N_HID), jnp.float32, -bound1, bound1)
    b1 = jax.random.uniform(k2, (1, N_HID), jnp.float32, -bound1, bound1)

    bound2 = 1.0 / math.sqrt(N_HID)
    w2 = jax.random.uniform(k3, (N_HID, N_OUT), jnp.float32, -bound2, bound2)
    b2 = jax.random.uniform(k4, (1, N_OUT), jnp.float32, -bound2, bound2)
    return w1, b1, w2, b2


if __name__ == "__main__":
    key = jax.random.PRNGKey(0)
    kx, kp = jax.random.split(key)

    # Small MNIST-like batch: (B=2, C=1, H=28, W=28)
    x = jax.random.normal(kx, (2, 1, 28, 28), jnp.float32)
    w1, b1, w2, b2 = init_params(kp)

    out = mlp_forward(x, w1, b1, w2, b2)
    out = jax.block_until_ready(out)

    # Reference check in plain JAX f32 (bf16 matmul inputs => loosened tolerance).
    x2d = x.reshape(2, K_IN)
    ref = jnp.maximum(x2d @ w1 + b1, 0.0) @ w2 + b2
    assert out.shape == (2, N_OUT)
    assert jnp.allclose(out, ref, atol=5e-2, rtol=5e-2), (
        float(jnp.max(jnp.abs(out - ref))))

    print("KERNEL_OK")
</pallas_src>

<mosaic_0001>
module attributes {stable_mosaic.version = 11 : i64} {
  func.func @mlp_kernel(%arg0: i32, %arg1: memref<128x896xbf16, #tpu.memory_space<vmem>>, %arg2: memref<896x256xbf16, #tpu.memory_space<vmem>>, %arg3: memref<1x256xf32, #tpu.memory_space<vmem>>, %arg4: memref<256x128xbf16, #tpu.memory_space<vmem>>, %arg5: memref<1x128xf32, #tpu.memory_space<vmem>>, %arg6: memref<128x128xf32, #tpu.memory_space<vmem>>) attributes {dimension_semantics = [#tpu.dimension_semantics<parallel>], iteration_bounds = array<i64: 1>, scalar_prefetch = 0 : i64, scratch_operands = 0 : i64, tpu.core_type = #tpu.core_type<tc>, window_params = [{transform_indices = @transform_0, window_bounds = array<i64: 128, 896>}, {pipeline_mode = #tpu.pipeline_mode<synchronous>, transform_indices = @transform_1, window_bounds = array<i64: 896, 256>}, {pipeline_mode = #tpu.pipeline_mode<synchronous>, transform_indices = @transform_2, window_bounds = array<i64: 1, 256>}, {pipeline_mode = #tpu.pipeline_mode<synchronous>, transform_indices = @transform_3, window_bounds = array<i64: 256, 128>}, {pipeline_mode = #tpu.pipeline_mode<synchronous>, transform_indices = @transform_4, window_bounds = array<i64: 1, 128>}, {transform_indices = @transform_5, window_bounds = array<i64: 128, 128>}]} {
    %c0 = arith.constant 0 : index
    %c0_0 = arith.constant 0 : index
    %0 = vector.load %arg1[%c0, %c0_0] : memref<128x896xbf16, #tpu.memory_space<vmem>>, vector<128x896xbf16>
    %c0_1 = arith.constant 0 : index
    %c0_2 = arith.constant 0 : index
    %1 = vector.load %arg2[%c0_1, %c0_2] : memref<896x256xbf16, #tpu.memory_space<vmem>>, vector<896x256xbf16>
    %cst = arith.constant dense<0.000000e+00> : vector<128x256xf32>
    %2 = tpu.matmul %0, %1, %cst {dimension_numbers = #tpu.dot_dimension_numbers<[1], [0], [0], [1], [0, 0, 1, 1], [], []>} : vector<128x896xbf16>, vector<896x256xbf16>, vector<128x256xf32> -> vector<128x256xf32>
    %c0_3 = arith.constant 0 : index
    %c0_4 = arith.constant 0 : index
    %3 = vector.load %arg3[%c0_3, %c0_4] : memref<1x256xf32, #tpu.memory_space<vmem>>, vector<1x256xf32>
    %4 = vector.broadcast %3 : vector<1x256xf32> to vector<128x256xf32>
    %5 = arith.addf %2, %4 : vector<128x256xf32>
    %cst_5 = arith.constant 0.000000e+00 : f32
    %6 = vector.broadcast %cst_5 : f32 to vector<128x256xf32>
    %7 = arith.maximumf %5, %6 : vector<128x256xf32>
    %8 = arith.truncf %7 : vector<128x256xf32> to vector<128x256xbf16>
    %c0_6 = arith.constant 0 : index
    %c0_7 = arith.constant 0 : index
    %9 = vector.load %arg4[%c0_6, %c0_7] : memref<256x128xbf16, #tpu.memory_space<vmem>>, vector<256x128xbf16>
    %cst_8 = arith.constant dense<0.000000e+00> : vector<128x128xf32>
    %10 = tpu.matmul %8, %9, %cst_8 {dimension_numbers = #tpu.dot_dimension_numbers<[1], [0], [0], [1], [0, 0, 1, 1], [], []>} : vector<128x256xbf16>, vector<256x128xbf16>, vector<128x128xf32> -> vector<128x128xf32>
    %c0_9 = arith.constant 0 : index
    %c0_10 = arith.constant 0 : index
    %11 = vector.load %arg5[%c0_9, %c0_10] : memref<1x128xf32, #tpu.memory_space<vmem>>, vector<1x128xf32>
    %12 = vector.broadcast %11 : vector<1x128xf32> to vector<128x128xf32>
    %13 = arith.addf %10, %12 : vector<128x128xf32>
    %c0_11 = arith.constant 0 : index
    %c0_12 = arith.constant 0 : index
    %14 = vector.load %arg6[%c0_11, %c0_12] : memref<128x128xf32, #tpu.memory_space<vmem>>, vector<128x128xf32>
    tpu.vector_store %arg6[%c0_11, %c0_12], %13 {strides = array<i32>} : memref<128x128xf32, #tpu.memory_space<vmem>>, vector<128x128xf32>,
    return
  }
  func.func @transform_0(%arg0: i32) -> (i32, i32) {
    %c0_i32 = arith.constant 0 : i32
    %c0_i32_0 = arith.constant 0 : i32
    return %arg0, %c0_i32 : i32, i32
  }
  func.func @transform_1(%arg0: i32) -> (i32, i32) {
    %c0_i32 = arith.constant 0 : i32
    %c0_i32_0 = arith.constant 0 : i32
    %c0_i32_1 = arith.constant 0 : i32
    return %c0_i32, %c0_i32_0 : i32, i32
  }
  func.func @transform_2(%arg0: i32) -> (i32, i32) {
    %c0_i32 = arith.constant 0 : i32
    %c0_i32_0 = arith.constant 0 : i32
    %c0_i32_1 = arith.constant 0 : i32
    return %c0_i32, %c0_i32_0 : i32, i32
  }
  func.func @transform_3(%arg0: i32) -> (i32, i32) {
    %c0_i32 = arith.constant 0 : i32
    %c0_i32_0 = arith.constant 0 : i32
    %c0_i32_1 = arith.constant 0 : i32
    return %c0_i32, %c0_i32_0 : i32, i32
  }
  func.func @transform_4(%arg0: i32) -> (i32, i32) {
    %c0_i32 = arith.constant 0 : i32
    %c0_i32_0 = arith.constant 0 : i32
    %c0_i32_1 = arith.constant 0 : i32
    return %c0_i32, %c0_i32_0 : i32, i32
  }
  func.func @transform_5(%arg0: i32) -> (i32, i32) {
    %c0_i32 = arith.constant 0 : i32
    %c0_i32_0 = arith.constant 0 : i32
    return %arg0, %c0_i32 : i32, i32
  }
}

</mosaic_0001>

<bundles_post_ra>
// kernel: tpu_custom_call.1
= control target key start
LH: loop header
LB: loop body
LE: loop exit
PB: predicated region body
PF: predicated region fallthrough
CT: control target
= control target key end

     0   :  { %10 = vsyncpa [#allocation3], 0  ;;  %s2894_s0 = inlined_call_operand.hbm [shape: bf16[128,896], index: 0, kind: input, shape index: {}]   ;;  %s2895_s1 = inlined_call_operand.hbm [shape: bf16[896,256], index: 1, kind: input, shape index: {}]   ;;  %s2896_s2 = inlined_call_operand.vmem [shape: f32[1,256], index: 2, kind: input, shape index: {}]   ;;  %s2897_s3 = inlined_call_operand.hbm [shape: bf16[256,128], index: 3, kind: input, shape index: {}]   ;;  %s2898_s4 = inlined_call_operand.vmem [shape: f32[1,128], index: 4, kind: input, shape index: {}]   ;;  %s2899_s5 = inlined_call_operand.hbm [shape: f32[128,128], index: 5, kind: output, shape index: {}]  }
   0x1   :  { %11 = vsyncpa [#allocation6], 0 }
   0x2   :  { %12 = vsyncpa [#allocation4], 0  ;;  %s2643_s18 = smov [#allocation5]   ;;  %s2549_s22 = scalar_lea.hbm %s2895_s1, 14336 }
   0x3   :  { %s30_s19 = sshll.u32 %s2643_s18, 4  ;;  %p2550_p0 = scmp.ne.s32.totalorder %s2895_s1, %s2549_s22  ;;  %s31_s19 = int_to_ptr.vmem [resolvable:$true] %s30_s19 }
   0x4   :  { %p2553_p1 = scmp.lt.u32.totalorder %s2549_s22, %s2895_s1 }
   0x6   :  { %p2555_p2 = pnand %p2553_p1, %p2550_p0 }
   0x8   :  { %2558 = shalt.err (!%p2555_p2)
}
   0x9   :  { %s2559_s27 = scalar_lea.vmem %s31_s19, 14336  ;;  %p2564_p4 = scmp.lt.s32.totalorder %s31_s19, %s31_s19 }
   0xa   :  { %p2560_p3 = scmp.ne.s32.totalorder %s31_s19, %s2559_s27  ;;  %p2565_p5 = scmp.lt.s32.totalorder %s2559_s27, %s2559_s27 }
   0xc   :  { %p2566_p6 = por %p2565_p5, %p2564_p4 }
   0xe   :  { %p2567_p7 = pnand %p2566_p6, %p2560_p3 }
  0x10   :  { %2570 = shalt.err (!%p2567_p7)
}
  0x11   :  { %s2644_s28 = smov 128   ;;  %s2645_s29 = smov 8  }
  0x12   :  { %36 = dma.hbm_to_vmem [thread:$0]  %s2895_s1, 14336, %s31_s19, [#allocation6], %s2644_s28, %s2644_s28, %s2645_s29  }
  0x13   :  { %s2646_s7 = smov [#allocation2]   ;;  %s2571_s11 = scalar_lea.hbm %s2894_s0, 7168 }
  0x14   :  { %s18_s8 = sshll.u32 %s2646_s7, 4  ;;  %p2572_p8 = scmp.ne.s32.totalorder %s2894_s0, %s2571_s11  ;;  %s19_s8 = int_to_ptr.vmem [resolvable:$true] %s18_s8 }
  0x15   :  { %p2575_p9 = scmp.lt.u32.totalorder %s2571_s11, %s2894_s0 }
  0x17   :  { %p2577_p10 = pnand %p2575_p9, %p2572_p8 }
  0x19   :  { %2580 = shalt.err (!%p2577_p10)
}
  0x1a   :  { %s2581_s16 = scalar_lea.vmem %s19_s8, 7168  ;;  %p2586_p12 = scmp.lt.s32.totalorder %s19_s8, %s19_s8 }
  0x1b   :  { %p2582_p11 = scmp.ne.s32.totalorder %s19_s8, %s2581_s16  ;;  %p2587_p13 = scmp.lt.s32.totalorder %s2581_s16, %s2581_s16 }
  0x1d   :  { %p2588_p0 = por %p2587_p13, %p2586_p12 }
  0x1f   :  { %p2589_p1 = pnand %p2588_p0, %p2582_p11 }
  0x21   :  { %2592 = shalt.err (!%p2589_p1)
}
  0x22   :  { %s2647_s1 = smov 448   ;;  %s2648_s17 = smov 28  }
  0x23   :  { %24 = dma.hbm_to_vmem [thread:$0]  %s2894_s0, 7168, %s19_s8, [#allocation3], %s2647_s1, %s2647_s1, %s2648_s17  }
  0x24   :  { %s2649_s20 = smov [#allocation7]   ;;  %s2593_s24 = scalar_lea.hbm %s2897_s3, 2048 }
  0x25   :  { %s44_s21 = sshll.u32 %s2649_s20, 4  ;;  %p2594_p2 = scmp.ne.s32.totalorder %s2897_s3, %s2593_s24  ;;  %s45_s21 = int_to_ptr.vmem [resolvable:$true] %s44_s21 }
  0x26   :  { %p2597_p3 = scmp.lt.u32.totalorder %s2593_s24, %s2897_s3 }
  0x28   :  { %p2599_p4 = pnand %p2597_p3, %p2594_p2 }
  0x2a   :  { %2602 = shalt.err (!%p2599_p4)
}
  0x2b   :  { %s2603_s6 = scalar_lea.vmem %s45_s21, 2048  ;;  %p2608_p6 = scmp.lt.s32.totalorder %s45_s21, %s45_s21 }
  0x2c   :  { %p2604_p5 = scmp.ne.s32.totalorder %s45_s21, %s2603_s6  ;;  %p2609_p7 = scmp.lt.s32.totalorder %s2603_s6, %s2603_s6 }
  0x2e   :  { %p2610_p8 = por %p2609_p7, %p2608_p6 }
  0x30   :  { %p2611_p9 = pnand %p2610_p8, %p2604_p5 }
  0x32   :  { %2614 = shalt.err (!%p2611_p9)
}
  0x33   :  { %s2650_s0 = smov 64   ;;  %s2651_s7 = smov 4  }
  0x34   :  { %50 = dma.hbm_to_vmem [thread:$0]  %s2897_s3, 2048, %s45_s21, [#allocation6], %s2650_s0, %s2650_s0, %s2651_s7  }
  0x35   :  { %2637 = dma.done.wait [#allocation3], 7168  }
  0x36   :  { %2638 = vsyncadd [#allocation3], 4294960128 }
  0x37   :  { %2639 = dma.done.wait [#allocation6], 16384  }
  0x38   :  { %2640 = vsyncadd [#allocation6], 4294950912  ;;  %v2285_v0 = vld [vmem:[#allocation5 + $0x4] ss:$8 sps:$4 sm:$0xff]   ;;  %v2289_v2 = vld [vmem:[#allocation5] ss:$8 sps:$4 sm:$0xff]  }
  0x39   :  { %v2287_v1 = vld [vmem:[#allocation5 + $0x104] ss:$8 sps:$4 sm:$0xff]   ;;  %1099 = vmatprep.subr.bf16.mxu1 %v2285_v0  ;;  %v2290_v3 = vld [vmem:[#allocation5 + $0x100] ss:$8 sps:$4 sm:$0xff]   ;;  %v2291_v4 = vld [vmem:[#allocation5 + $0x14] ss:$8 sps:$4 sm:$0xff]  }
  0x3a   :  { %1212 = vmatprep.subr.bf16.mxu0 %v2287_v1  ;;  %1100 = vmatpush1.bf16.msra.mxu1 %v2289_v2  ;;  %v2293_v5 = vld [vmem:[#allocation5 + $0x114] ss:$8 sps:$4 sm:$0xff]   ;;  %v2295_v6 = vld [vmem:[#allocation5 + $0x10] ss:$8 sps:$4 sm:$0xff]   ;;  %v2297_v8 = vld [vmem:[#allocation5 + $0x24] ss:$8 sps:$4 sm:$0xff]  }
  0x3b   :  { %1213 = vmatpush1.bf16.msra.mxu0 %v2290_v3  ;;  %1101 = vmatprep.subr.bf16.mxu1 %v2291_v4  ;;  %v2296_v7 = vld [vmem:[#allocation5 + $0x110] ss:$8 sps:$4 sm:$0xff]   ;;  %v2299_v9 = vld [vmem:[#allocation5 + $0x124] ss:$8 sps:$4 sm:$0xff]   ;;  %v2301_v10 = vld [vmem:[#allocation5 + $0x20] ss:$8 sps:$4 sm:$0xff]  }
  0x3c   :  { %1214 = vmatprep.subr.bf16.mxu0 %v2293_v5  ;;  %v2302_v11 = vld [vmem:[#allocation5 + $0x120] ss:$8 sps:$4 sm:$0xff]   ;;  %v2303_v12 = vld [vmem:[#allocation5 + $0x34] ss:$8 sps:$4 sm:$0xff]   ;;  %v2307_v14 = vld [vmem:[#allocation5 + $0x30] ss:$8 sps:$4 sm:$0xff]  }
  0x3d   :  { %v2305_v13 = vld [vmem:[#allocation5 + $0x134] ss:$8 sps:$4 sm:$0xff]   ;;  %v2308_v15 = vld [vmem:[#allocation5 + $0x130] ss:$8 sps:$4 sm:$0xff]   ;;  %v2309_v16 = vld [vmem:[#allocation5 + $0x44] ss:$8 sps:$4 sm:$0xff]  }
  0x3e   :  { %1102 = vmatpush1.bf16.msra.mxu1 %v2295_v6  ;;  %v2311_v17 = vld [vmem:[#allocation5 + $0x144] ss:$8 sps:$4 sm:$0xff]   ;;  %v2313_v18 = vld [vmem:[#allocation5 + $0x40] ss:$8 sps:$4 sm:$0xff]   ;;  %v2315_v20 = vld [vmem:[#allocation5 + $0x54] ss:$8 sps:$4 sm:$0xff]  }
  0x3f   :  { %1215 = vmatpush1.bf16.msra.mxu0 %v2296_v7  ;;  %1103 = vmatprep.subr.bf16.mxu1 %v2297_v8  ;;  %v2314_v19 = vld [vmem:[#allocation5 + $0x140] ss:$8 sps:$4 sm:$0xff]   ;;  %v2317_v21 = vld [vmem:[#allocation5 + $0x154] ss:$8 sps:$4 sm:$0xff]   ;;  %v2319_v22 = vld [vmem:[#allocation5 + $0x50] ss:$8 sps:$4 sm:$0xff]  }
  0x40   :  { %1216 = vmatprep.subr.bf16.mxu0 %v2299_v9  ;;  %v2320_v23 = vld [vmem:[#allocation5 + $0x150] ss:$8 sps:$4 sm:$0xff]   ;;  %v2321_v24 = vld [vmem:[#allocation5 + $0x64] ss:$8 sps:$4 sm:$0xff]   ;;  %v2325_v26 = vld [vmem:[#allocation5 + $0x60] ss:$8 sps:$4 sm:$0xff]  }
  0x41   :  { %v2323_v25 = vld [vmem:[#allocation5 + $0x164] ss:$8 sps:$4 sm:$0xff]   ;;  %v2326_v27 = vld [vmem:[#allocation5 + $0x160] ss:$8 sps:$4 sm:$0xff]   ;;  %v2327_v28 = vld [vmem:[#allocation5 + $0x74] ss:$8 sps:$4 sm:$0xff]  }
  0x42   :  { %1104 = vmatpush1.bf16.msra.mxu1 %v2301_v10  ;;  %v2329_v29 = vld [vmem:[#allocation5 + $0x174] ss:$8 sps:$4 sm:$0xff]   ;;  %v2331_v30 = vld [vmem:[#allocation5 + $0x70] ss:$8 sps:$4 sm:$0xff]   ;;  %v2333_v32 = vld [vmem:[#allocation5 + $0x84] ss:$8 sps:$4 sm:$0xff]  }
  0x43   :  { %1217 = vmatpush1.bf16.msra.mxu0 %v2302_v11  ;;  %1105 = vmatprep.subr.bf16.mxu1 %v2303_v12  ;;  %v2332_v31 = vld [vmem:[#allocation5 + $0x170] ss:$8 sps:$4 sm:$0xff]   ;;  %v2335_v33 = vld [vmem:[#allocation5 + $0x184] ss:$8 sps:$4 sm:$0xff]   ;;  %v2337_v34 = vld [vmem:[#allocation5 + $0x80] ss:$8 sps:$4 sm:$0xff]  }
  0x44   :  { %1218 = vmatprep.subr.bf16.mxu0 %v2305_v13  ;;  %v2338_v35 = vld [vmem:[#allocation5 + $0x180] ss:$8 sps:$4 sm:$0xff]   ;;  %v2339_v36 = vld [vmem:[#allocation5 + $0x94] ss:$8 sps:$4 sm:$0xff]   ;;  %v2343_v38 = vld [vmem:[#allocation5 + $0x90] ss:$8 sps:$4 sm:$0xff]  }
  0x45   :  { %v2341_v37 = vld [vmem:[#allocation5 + $0x194] ss:$8 sps:$4 sm:$0xff]   ;;  %v2344_v39 = vld [vmem:[#allocation5 + $0x190] ss:$8 sps:$4 sm:$0xff]   ;;  %v2345_v40 = vld [vmem:[#allocation5 + $0xa4] ss:$8 sps:$4 sm:$0xff]  }
  0x46   :  { %1106 = vmatpush1.bf16.msra.mxu1 %v2307_v14  ;;  %v2347_v41 = vld [vmem:[#allocation5 + $0x1a4] ss:$8 sps:$4 sm:$0xff]   ;;  %v2349_v42 = vld [vmem:[#allocation5 + $0xa0] ss:$8 sps:$4 sm:$0xff]   ;;  %v2351_v44 = vld [vmem:[#allocation5 + $0xb4] ss:$8 sps:$4 sm:$0xff]  }
  0x47   :  { %1219 = vmatpush1.bf16.msra.mxu0 %v2308_v15  ;;  %1107 = vmatprep.subr.bf16.mxu1 %v2309_v16  ;;  %v2350_v43 = vld [vmem:[#allocation5 + $0x1a0] ss:$8 sps:$4 sm:$0xff]   ;;  %v2353_v45 = vld [vmem:[#allocation5 + $0x1b4] ss:$8 sps:$4 sm:$0xff]   ;;  %v2355_v46 = vld [vmem:[#allocation5 + $0xb0] ss:$8 sps:$4 sm:$0xff]  }
  0x48   :  { %1220 = vmatprep.subr.bf16.mxu0 %v2311_v17  ;;  %v2356_v47 = vld [vmem:[#allocation5 + $0x1b0] ss:$8 sps:$4 sm:$0xff]   ;;  %v2357_v48 = vld [vmem:[#allocation5 + $0xc4] ss:$8 sps:$4 sm:$0xff]   ;;  %v2361_v52 = vld [vmem:[#allocation5 + $0xc0] ss:$8 sps:$4 sm:$0xff]  }
  0x49   :  { %v2383_v49 = vld [vmem:[#allocation2 + $0x4] ss:$28 sps:$4 sm:$0xff]   ;;  %v2386_v51 = vld [vmem:[#allocation2 + $0xc] ss:$28 sps:$4 sm:$0xff]   ;;  %v2363_v54 = vld [vmem:[#allocation5 + $0xd4] ss:$8 sps:$4 sm:$0xff]  }
  0x4a   :  { %1108 = vmatpush1.bf16.msra.mxu1 %v2313_v18  ;;  %v2359_v50 = vld [vmem:[#allocation5 + $0x1c4] ss:$8 sps:$4 sm:$0xff]   ;;  %1131 = vmatprep.mubr.bf16.mxu1 %v2383_v49  ;;  %v2362_v53 = vld [vmem:[#allocation5 + $0x1c0] ss:$8 sps:$4 sm:$0xff]   ;;  %v2365_v55 = vld [vmem:[#allocation5 + $0x1d4] ss:$8 sps:$4 sm:$0xff]  }
  0x4b   :  { %1221 = vmatpush1.bf16.msra.mxu0 %v2314_v19  ;;  %1109 = vmatprep.subr.bf16.mxu1 %v2315_v20  ;;  %v2367_v56 = vld [vmem:[#allocation5 + $0xd0] ss:$8 sps:$4 sm:$0xff]   ;;  %v2369_v58 = vld [vmem:[#allocation5 + $0xe4] ss:$8 sps:$4 sm:$0xff]   ;;  %v2373_v60 = vld [vmem:[#allocation5 + $0xe0] ss:$8 sps:$4 sm:$0xff]  }
  0x4c   :  { %1222 = vmatprep.subr.bf16.mxu0 %v2317_v21  ;;  %1244 = vmatprep.mubr.bf16.mxu0 %v2386_v51  ;;  %v2368_v57 = vld [vmem:[#allocation5 + $0x1d0] ss:$8 sps:$4 sm:$0xff]   ;;  %v2371_v59 = vld [vmem:[#allocation5 + $0x1e4] ss:$8 sps:$4 sm:$0xff]   ;;  %v2374_v61 = vld [vmem:[#allocation5 + $0x1e0] ss:$8 sps:$4 sm:$0xff]  }
  0x4d   :  { %v2375_v62 = vld [vmem:[#allocation5 + $0xf4] ss:$8 sps:$4 sm:$0xff]   ;;  %v2379_v0 = vld [vmem:[#allocation5 + $0xf0] ss:$8 sps:$4 sm:$0xff]   ;;  %v2389_v2 = vld [vmem:[#allocation5 + $0x204] ss:$8 sps:$4 sm:$0xff]  }
  0x4e   :  { %1110 = vmatpush1.bf16.msra.mxu1 %v2319_v22  ;;  %v2377_v63 = vld [vmem:[#allocation5 + $0x1f4] ss:$8 sps:$4 sm:$0xff]   ;;  %v2380_v1 = vld [vmem:[#allocation5 + $0x1f0] ss:$8 sps:$4 sm:$0xff]   ;;  %v2384_v4 = vld [vmem:[#allocation2 + $0x8] ss:$28 sps:$4 sm:$0xff]  }
  0x4f   :  { %1223 = vmatpush1.bf16.msra.mxu0 %v2320_v23  ;;  %1111 = vmatprep.subr.bf16.mxu1 %v2321_v24  ;;  %v2381_v3 = vld [vmem:[#allocation2] ss:$28 sps:$4 sm:$0xff]   ;;  %v2390_v9 = vld [vmem:[#allocation5 + $0x210] ss:$8 sps:$4 sm:$0xff]   ;;  %v2401_v10 = vld [vmem:[#allocation5 + $0x224] ss:$8 sps:$4 sm:$0xff]  }
  0x50   :  { %1224 = vmatprep.subr.bf16.mxu0 %v2323_v25  ;;  %v2387_v5 = vld [vmem:[#allocation5 + $0x200] ss:$8 sps:$4 sm:$0xff]   ;;  %v2392_v6 = vld [vmem:[#allocation5 + $0x214] ss:$8 sps:$4 sm:$0xff]   ;;  %v2402_v17 = vld [vmem:[#allocation5 + $0x230] ss:$8 sps:$4 sm:$0xff]  }
  0x51   :  { %v2393_v7 = vld [vmem:[#allocation2 + $0x3c] ss:$28 sps:$4 sm:$0xff]   ;;  %v2395_v8 = vld [vmem:[#allocation2 + $0x44] ss:$28 sps:$4 sm:$0xff]   ;;  %v2405_v15 = vld [vmem:[#allocation2 + $0x74] ss:$28 sps:$4 sm:$0xff]  }
  0x52   :  { %1112 = vmatpush1.bf16.msra.mxu1 %v2325_v26  ;;  %v2397_v11 = vld [vmem:[#allocation2 + $0x38] ss:$28 sps:$4 sm:$0xff]   ;;  %v2398_v12 = vld [vmem:[#allocation2 + $0x40] ss:$28 sps:$4 sm:$0xff]   ;;  %v2413_v18 = vld [vmem:[#allocation5 + $0x244] ss:$8 sps:$4 sm:$0xff]  }
  0x53   :  { %1225 = vmatpush1.bf16.msra.mxu0 %v2326_v27  ;;  %1113 = vmatprep.subr.bf16.mxu1 %v2327_v28  ;;  %v2399_v13 = vld [vmem:[#allocation5 + $0x220] ss:$8 sps:$4 sm:$0xff]   ;;  %v2404_v14 = vld [vmem:[#allocation5 + $0x234] ss:$8 sps:$4 sm:$0xff]   ;;  %v2409_v19 = vld [vmem:[#allocation2 + $0x70] ss:$28 sps:$4 sm:$0xff]  }
  0x54   :  { %1226 = vmatprep.subr.bf16.mxu0 %v2329_v29  ;;  %v2407_v16 = vld [vmem:[#allocation2 + $0x7c] ss:$28 sps:$4 sm:$0xff]   ;;  %v2411_v21 = vld [vmem:[#allocation5 + $0x240] ss:$8 sps:$4 sm:$0xff]   ;;  %v2419_v24 = vld [vmem:[#allocation2 + $0xb4] ss:$28 sps:$4 sm:$0xff]  }
  0x55   :  { %v2410_v20 = vld [vmem:[#allocation2 + $0x78] ss:$28 sps:$4 sm:$0xff]   ;;  %v2417_v23 = vld [vmem:[#allocation2 + $0xac] ss:$28 sps:$4 sm:$0xff]  }
  0x56   :  { %1114 = vmatpush1.bf16.msra.mxu1 %v2331_v30  ;;  %v2416_v22 = vld [vmem:[#allocation5 + $0x254] ss:$8 sps:$4 sm:$0xff]   ;;  %v2414_v25 = vld [vmem:[#allocation5 + $0x250] ss:$8 sps:$4 sm:$0xff]   ;;  %v2425_v26 = vld [vmem:[#allocation5 + $0x264] ss:$8 sps:$4 sm:$0xff]  }
  0x57   :  { %1227 = vmatpush1.bf16.msra.mxu0 %v2332_v31  ;;  %1115 = vmatprep.subr.bf16.mxu1 %v2333_v32  ;;  %v2421_v27 = vld [vmem:[#allocation2 + $0xa8] ss:$28 sps:$4 sm:$0xff]   ;;  %v2422_v28 = vld [vmem:[#allocation2 + $0xb0] ss:$28 sps:$4 sm:$0xff]   ;;  %v2428_v30 = vld [vmem:[#allocation5 + $0x274] ss:$8 sps:$4 sm:$0xff]  }
  0x58   :  { %1228 = vmatprep.subr.bf16.mxu0 %v2335_v33  ;;  %v2423_v29 = vld [vmem:[#allocation5 + $0x260] ss:$8 sps:$4 sm:$0xff]   ;;  %v2426_v33 = vld [vmem:[#allocation5 + $0x270] ss:$8 sps:$4 sm:$0xff]  }
  0x59   :  { %v2429_v31 = vld [vmem:[#allocation2 + $0xe4] ss:$28 sps:$4 sm:$0xff]   ;;  %v2431_v32 = vld [vmem:[#allocation2 + $0xec] ss:$28 sps:$4 sm:$0xff]   ;;  %v2450_v49 = vld [vmem:[#allocation5 + $0x2b0] ss:$8 sps:$4 sm:$0xff]  }
  0x5a   :  { %1116 = vmatpush1.bf16.msra.mxu1 %v2337_v34  ;;  %v2437_v34 = vld [vmem:[#allocation5 + $0x284] ss:$8 sps:$4 sm:$0xff]  }
  0x5b   :  { %1229 = vmatpush1.bf16.msra.mxu0 %v2338_v35  ;;  %1117 = vmatprep.subr.bf16.mxu1 %v2339_v36  ;;  %v2433_v35 = vld [vmem:[#allocation2 + $0xe0] ss:$28 sps:$4 sm:$0xff]   ;;  %v2434_v36 = vld [vmem:[#allocation2 + $0xe8] ss:$28 sps:$4 sm:$0xff]   ;;  %v2457_v51 = vld [vmem:[#allocation2 + $0x150] ss:$28 sps:$4 sm:$0xff]  }
  0x5c   :  { %1230 = vmatprep.subr.bf16.mxu0 %v2341_v37  ;;  %v2435_v37 = vld [vmem:[#allocation5 + $0x280] ss:$8 sps:$4 sm:$0xff]  }
  0x5e   :  { %1118 = vmatpush1.bf16.msra.mxu1 %v2343_v38  ;;  %v2440_v38 = vld [vmem:[#allocation5 + $0x294] ss:$8 sps:$4 sm:$0xff]  }
  0x5f   :  { %1231 = vmatpush1.bf16.msra.mxu0 %v2344_v39  ;;  %1119 = vmatprep.subr.bf16.mxu1 %v2345_v40  ;;  %v2441_v39 = vld [vmem:[#allocation2 + $0x11c] ss:$28 sps:$4 sm:$0xff]   ;;  %v2443_v40 = vld [vmem:[#allocation2 + $0x124] ss:$28 sps:$4 sm:$0xff]  }
  0x60   :  { %1232 = vmatprep.subr.bf16.mxu0 %v2347_v41  ;;  %v2438_v41 = vld [vmem:[#allocation5 + $0x290] ss:$8 sps:$4 sm:$0xff]  }
  0x62   :  { %1120 = vmatpush1.bf16.msra.mxu1 %v2349_v42  ;;  %v2449_v42 = vld [vmem:[#allocation5 + $0x2a4] ss:$8 sps:$4 sm:$0xff]  }
  0x63   :  { %1233 = vmatpush1.bf16.msra.mxu0 %v2350_v43  ;;  %1121 = vmatprep.subr.bf16.mxu1 %v2351_v44  ;;  %v2445_v43 = vld [vmem:[#allocation2 + $0x118] ss:$28 sps:$4 sm:$0xff]   ;;  %v2446_v44 = vld [vmem:[#allocation2 + $0x120] ss:$28 sps:$4 sm:$0xff]  }
  0x64   :  { %1234 = vmatprep.subr.bf16.mxu0 %v2353_v45  ;;  %v2447_v45 = vld [vmem:[#allocation5 + $0x2a0] ss:$8 sps:$4 sm:$0xff]  }
  0x66   :  { %1122 = vmatpush1.bf16.msra.mxu1 %v2355_v46  ;;  %v2452_v46 = vld [vmem:[#allocation5 + $0x2b4] ss:$8 sps:$4 sm:$0xff]  }
  0x67   :  { %1235 = vmatpush1.bf16.msra.mxu0 %v2356_v47  ;;  %1123 = vmatprep.subr.bf16.mxu1 %v2357_v48  ;;  %v2453_v47 = vld [vmem:[#allocation2 + $0x154] ss:$28 sps:$4 sm:$0xff]   ;;  %v2455_v48 = vld [vmem:[#allocation2 + $0x15c] ss:$28 sps:$4 sm:$0xff]  }
  0x68   :  { %1236 = vmatprep.subr.bf16.mxu0 %v2359_v50  ;;  %v2461_v50 = vld [vmem:[#allocation5 + $0x2c4] ss:$8 sps:$4 sm:$0xff]  }
  0x6a   :  { %1124 = vmatpush1.bf16.msra.mxu1 %v2361_v52  ;;  %v2458_v52 = vld [vmem:[#allocation2 + $0x158] ss:$28 sps:$4 sm:$0xff]  }
  0x6b   :  { %1237 = vmatpush1.bf16.msra.mxu0 %v2362_v53  ;;  %1125 = vmatprep.subr.bf16.mxu1 %v2363_v54  ;;  %v2459_v53 = vld [vmem:[#allocation5 + $0x2c0] ss:$8 sps:$4 sm:$0xff]   ;;  %v2464_v54 = vld [vmem:[#allocation5 + $0x2d4] ss:$8 sps:$4 sm:$0xff]  }
  0x6c   :  { %1238 = vmatprep.subr.bf16.mxu0 %v2365_v55  ;;  %v2462_v55 = vld [vmem:[#allocation5 + $0x2d0] ss:$8 sps:$4 sm:$0xff]  }
  0x6e   :  { %1126 = vmatpush1.bf16.msra.mxu1 %v2367_v56  ;;  %v2465_v56 = vld [vmem:[#allocation2 + $0x18c] ss:$28 sps:$4 sm:$0xff]  }
  0x6f   :  { %1239 = vmatpush1.bf16.msra.mxu0 %v2368_v57  ;;  %1127 = vmatprep.subr.bf16.mxu1 %v2369_v58  ;;  %v2467_v57 = vld [vmem:[#allocation2 + $0x194] ss:$28 sps:$4 sm:$0xff]   ;;  %v2473_v58 = vld [vmem:[#allocation5 + $0x2e4] ss:$8 sps:$4 sm:$0xff]  }
  0x70   :  { %1240 = vmatprep.subr.bf16.mxu0 %v2371_v59  ;;  %v2469_v59 = vld [vmem:[#allocation2 + $0x188] ss:$28 sps:$4 sm:$0xff]  }
  0x72   :  { %1128 = vmatpush1.bf16.msra.mxu1 %v2373_v60  ;;  %v2470_v60 = vld [vmem:[#allocation2 + $0x190] ss:$28 sps:$4 sm:$0xff]  }
  0x73   :  { %1241 = vmatpush1.bf16.msra.mxu0 %v2374_v61  ;;  %1129 = vmatprep.subr.bf16.mxu1 %v2375_v62  ;;  %v2471_v61 = vld [vmem:[#allocation5 + $0x2e0] ss:$8 sps:$4 sm:$0xff]   ;;  %v2476_v62 = vld [vmem:[#allocation5 + $0x2f4] ss:$8 sps:$4 sm:$0xff]  }
  0x74   :  { %1242 = vmatprep.subr.bf16.mxu0 %v2377_v63  ;;  %v2479_v63 = vld [vmem:[#allocation2 + $0x14] ss:$28 sps:$4 sm:$0xff]  }
  0x76   :  { %1130 = vmatpush1.bf16.msra.mxu1 %v2379_v0  ;;  %v2482_v0 = vld [vmem:[#allocation2 + $0xf4] ss:$28 sps:$4 sm:$0xff]  }
  0x77   :  { %1243 = vmatpush1.bf16.msra.mxu0 %v2380_v1  ;;  %2114 = vmatprep.subr.bf16.mxu1 %v2389_v2  ;;  %v2474_v1 = vld [vmem:[#allocation5 + $0x2f0] ss:$8 sps:$4 sm:$0xff]  }
  0x78   :  { %1325 = vmatprep.subr.bf16.mxu0 %v2389_v2  ;;  %v2485_v2 = vld [vmem:[#allocation5 + $0x304] ss:$8 sps:$4 sm:$0xff]  }
  0x79   :  { %1132 = vmatmul.mubr.bf16.vlgmr.msra.gmra.mrb[0].mxu1 %v2381_v3  ;;  %v2477_v3 = vld [vmem:[#allocation2 + $0x10] ss:$28 sps:$4 sm:$0xff]  }
  0x7a   :  { %1245 = vmatmul.mubr.bf16.vlgmr.msra.gmra.mrb[0].mxu0 %v2384_v4  ;;  %2130 = vmatpush1.bf16.msra.mxu1 %v2387_v5  ;;  %v2480_v4 = vld [vmem:[#allocation2 + $0xf0] ss:$28 sps:$4 sm:$0xff]  }
  0x7b   :  { %1326 = vmatpush1.bf16.msra.mxu0 %v2387_v5  ;;  %2115 = vmatprep.subr.bf16.mxu1 %v2392_v6  ;;  %v2483_v5 = vld [vmem:[#allocation5 + $0x300] ss:$8 sps:$4 sm:$0xff]  }
  0x7c   :  { %1327 = vmatprep.subr.bf16.mxu0 %v2392_v6  ;;  %1141 = vmatprep.mubr.bf16.mxu1 %v2393_v7  ;;  %v2489_v6 = vld [vmem:[#allocation2 + $0x4c] ss:$28 sps:$4 sm:$0xff]   ;;  %v2488_v7 = vld [vmem:[#allocation5 + $0x314] ss:$8 sps:$4 sm:$0xff]  }
  0x7d   :  { %1254 = vmatprep.mubr.bf16.mxu0 %v2395_v8  ;;  %v2491_v8 = vld [vmem:[#allocation2 + $0x12c] ss:$28 sps:$4 sm:$0xff]  }
  0x7e   :  { %2131 = vmatpush1.bf16.msra.mxu1 %v2390_v9 }
  0x7f   :  { %1328 = vmatpush1.bf16.msra.mxu0 %v2390_v9  ;;  %2116 = vmatprep.subr.bf16.mxu1 %v2401_v10  ;;  %v2486_v9 = vld [vmem:[#allocation5 + $0x310] ss:$8 sps:$4 sm:$0xff]  }
  0x80   :  { %1329 = vmatprep.subr.bf16.mxu0 %v2401_v10  ;;  %v2497_v10 = vld [vmem:[#allocation5 + $0x324] ss:$8 sps:$4 sm:$0xff]  }
  0x81   :  { %1142 = vmatmul.mubr.bf16.gmra.mrb[4].mxu1 %v2397_v11  ;;  %v2493_v11 = vld [vmem:[#allocation2 + $0x48] ss:$28 sps:$4 sm:$0xff]  }
  0x82   :  { %1255 = vmatmul.mubr.bf16.gmra.mrb[4].mxu0 %v2398_v12  ;;  %2132 = vmatpush1.bf16.msra.mxu1 %v2399_v13  ;;  %v2494_v12 = vld [vmem:[#allocation2 + $0x128] ss:$28 sps:$4 sm:$0xff]  }
  0x83   :  { %1330 = vmatpush1.bf16.msra.mxu0 %v2399_v13  ;;  %2117 = vmatprep.subr.bf16.mxu1 %v2404_v14  ;;  %v2495_v13 = vld [vmem:[#allocation5 + $0x320] ss:$8 sps:$4 sm:$0xff]  }
  0x84   :  { %1331 = vmatprep.subr.bf16.mxu0 %v2404_v14  ;;  %1151 = vmatprep.mubr.bf16.mxu1 %v2405_v15  ;;  %v2501_v14 = vld [vmem:[#allocation2 + $0x84] ss:$28 sps:$4 sm:$0xff]   ;;  %v2500_v15 = vld [vmem:[#allocation5 + $0x334] ss:$8 sps:$4 sm:$0xff]  }
  0x85   :  { %1264 = vmatprep.mubr.bf16.mxu0 %v2407_v16  ;;  %v2503_v16 = vld [vmem:[#allocation2 + $0x164] ss:$28 sps:$4 sm:$0xff]  }
  0x86   :  { %2133 = vmatpush1.bf16.msra.mxu1 %v2402_v17 }
  0x87   :  { %1332 = vmatpush1.bf16.msra.mxu0 %v2402_v17  ;;  %2118 = vmatprep.subr.bf16.mxu1 %v2413_v18  ;;  %v2498_v17 = vld [vmem:[#allocation5 + $0x330] ss:$8 sps:$4 sm:$0xff]  }
  0x88   :  { %1333 = vmatprep.subr.bf16.mxu0 %v2413_v18  ;;  %v2509_v18 = vld [vmem:[#allocation5 + $0x344] ss:$8 sps:$4 sm:$0xff]  }
  0x89   :  { %1152 = vmatmul.mubr.bf16.gmra.mrb[8].mxu1 %v2409_v19  ;;  %v2505_v19 = vld [vmem:[#allocation2 + $0x80] ss:$28 sps:$4 sm:$0xff]  }
  0x8a   :  { %1265 = vmatmul.mubr.bf16.gmra.mrb[8].mxu0 %v2410_v20  ;;  %2134 = vmatpush1.bf16.msra.mxu1 %v2411_v21  ;;  %v2506_v20 = vld [vmem:[#allocation2 + $0x160] ss:$28 sps:$4 sm:$0xff]  }
  0x8b   :  { %1334 = vmatpush1.bf16.msra.mxu0 %v2411_v21  ;;  %2119 = vmatprep.subr.bf16.mxu1 %v2416_v22  ;;  %v2507_v21 = vld [vmem:[#allocation5 + $0x340] ss:$8 sps:$4 sm:$0xff]  }
  0x8c   :  { %1335 = vmatprep.subr.bf16.mxu0 %v2416_v22  ;;  %1161 = vmatprep.mubr.bf16.mxu1 %v2417_v23  ;;  %v2513_v22 = vld [vmem:[#allocation2 + $0xbc] ss:$28 sps:$4 sm:$0xff]  }
  0x8d   :  { %1274 = vmatprep.mubr.bf16.mxu0 %v2419_v24  ;;  %v2512_v23 = vld [vmem:[#allocation5 + $0x354] ss:$8 sps:$4 sm:$0xff]  }
  0x8e   :  { %2135 = vmatpush1.bf16.msra.mxu1 %v2414_v25  ;;  %v2515_v24 = vld [vmem:[#allocation2 + $0x19c] ss:$28 sps:$4 sm:$0xff]  }
  0x8f   :  { %1336 = vmatpush1.bf16.msra.mxu0 %v2414_v25  ;;  %2120 = vmatprep.subr.bf16.mxu1 %v2425_v26  ;;  %v2510_v25 = vld [vmem:[#allocation5 + $0x350] ss:$8 sps:$4 sm:$0xff]  }
  0x90   :  { %1337 = vmatprep.subr.bf16.mxu0 %v2425_v26  ;;  %v2521_v26 = vld [vmem:[#allocation5 + $0x364] ss:$8 sps:$4 sm:$0xff]  }
  0x91   :  { %1162 = vmatmul.mubr.bf16.gmra.mrb[12].mxu1 %v2421_v27  ;;  %v2517_v27 = vld [vmem:[#allocation2 + $0xb8] ss:$28 sps:$4 sm:$0xff]  }
  0x92   :  { %1275 = vmatmul.mubr.bf16.gmra.mrb[12].mxu0 %v2422_v28  ;;  %2136 = vmatpush1.bf16.msra.mxu1 %v2423_v29  ;;  %v2518_v28 = vld [vmem:[#allocation2 + $0x198] ss:$28 sps:$4 sm:$0xff]  }
  0x93   :  { %1338 = vmatpush1.bf16.msra.mxu0 %v2423_v29  ;;  %2121 = vmatprep.subr.bf16.mxu1 %v2428_v30  ;;  %v2519_v29 = vld [vmem:[#allocation5 + $0x360] ss:$8 sps:$4 sm:$0xff]  }
  0x94   :  { %1339 = vmatprep.subr.bf16.mxu0 %v2428_v30  ;;  %1171 = vmatprep.mubr.bf16.mxu1 %v2429_v31  ;;  %v2524_v30 = vld [vmem:[#allocation5 + $0x374] ss:$8 sps:$4 sm:$0xff]   ;;  %v2522_v31 = vld [vmem:[#allocation5 + $0x370] ss:$8 sps:$4 sm:$0xff]  }
  0x95   :  { %1284 = vmatprep.mubr.bf16.mxu0 %v2431_v32  ;;  %v2652_v32 = vmov 0  }
  0x96   :  { %2137 = vmatpush1.bf16.msra.mxu1 %v2426_v33 }
  0x97   :  { %1340 = vmatpush1.bf16.msra.mxu0 %v2426_v33  ;;  %2122 = vmatprep.subr.bf16.mxu1 %v2437_v34  ;;  %v2525_v33 = vld [vmem:[#allocation2 + $0x18] ss:$28 sps:$4 sm:$0xff]  }
  0x98   :  { %1341 = vmatprep.subr.bf16.mxu0 %v2437_v34  ;;  %v2526_v34 = vld [vmem:[#allocation2 + $0x50] ss:$28 sps:$4 sm:$0xff]  }
  0x99   :  { %1172 = vmatmul.mubr.bf16.gmra.mrb[16].mxu1 %v2433_v35  ;;  %v2527_v35 = vld [vmem:[#allocation2 + $0x88] ss:$28 sps:$4 sm:$0xff]  }
  0x9a   :  { %1285 = vmatmul.mubr.bf16.gmra.mrb[16].mxu0 %v2434_v36  ;;  %2138 = vmatpush1.bf16.msra.mxu1 %v2435_v37  ;;  %v2528_v36 = vld [vmem:[#allocation2 + $0xc0] ss:$28 sps:$4 sm:$0xff]  }
  0x9b   :  { %1342 = vmatpush1.bf16.msra.mxu0 %v2435_v37  ;;  %2123 = vmatprep.subr.bf16.mxu1 %v2440_v38  ;;  %v2529_v37 = vld [vmem:[#allocation2 + $0xf8] ss:$28 sps:$4 sm:$0xff]  }
  0x9c   :  { %1343 = vmatprep.subr.bf16.mxu0 %v2440_v38  ;;  %1181 = vmatprep.mubr.bf16.mxu1 %v2441_v39  ;;  %v2530_v38 = vld [vmem:[#allocation2 + $0x130] ss:$28 sps:$4 sm:$0xff]   ;;  %v2531_v39 = vld [vmem:[#allocation2 + $0x168] ss:$28 sps:$4 sm:$0xff]  }
  0x9d   :  { %1294 = vmatprep.mubr.bf16.mxu0 %v2443_v40  ;;  %v2532_v40 = vld [vmem:[#allocation2 + $0x1a0] ss:$28 sps:$4 sm:$0xff]  }
  0x9e   :  { %2139 = vmatpush1.bf16.msra.mxu1 %v2438_v41 }
  0x9f   :  { %1344 = vmatpush1.bf16.msra.mxu0 %v2438_v41  ;;  %2124 = vmatprep.subr.bf16.mxu1 %v2449_v42  ;;  %v2533_v41 = vld [vmem:[#allocation7 + $0x40] sm:$0xff]  }
  0xa0   :  { %1345 = vmatprep.subr.bf16.mxu0 %v2449_v42  ;;  %v2534_v42 = vld [vmem:[#allocation7] sm:$0xff]  }
  0xa1   :  { %1182 = vmatmul.mubr.bf16.gmra.mrb[20].mxu1 %v2445_v43  ;;  %v2535_v43 = vld [vmem:[#allocation7 + $0x48] sm:$0xff]  }
  0xa2   :  { %1295 = vmatmul.mubr.bf16.gmra.mrb[20].mxu0 %v2446_v44  ;;  %2140 = vmatpush1.bf16.msra.mxu1 %v2447_v45  ;;  %v2536_v44 = vld [vmem:[#allocation7 + $0x8] sm:$0xff]  }
  0xa3   :  { %1346 = vmatpush1.bf16.msra.mxu0 %v2447_v45  ;;  %2125 = vmatprep.subr.bf16.mxu1 %v2452_v46  ;;  %v2537_v45 = vld [vmem:[#allocation7 + $0x50] sm:$0xff]  }
  0xa4   :  { %1347 = vmatprep.subr.bf16.mxu0 %v2452_v46  ;;  %1191 = vmatprep.mubr.bf16.mxu1 %v2453_v47  ;;  %v2538_v46 = vld [vmem:[#allocation7 + $0x10] sm:$0xff]   ;;  %v2539_v47 = vld [vmem:[#allocation7 + $0x58] sm:$0xff]  }
  0xa5   :  { %1304 = vmatprep.mubr.bf16.mxu0 %v2455_v48  ;;  %v2540_v48 = vld [vmem:[#allocation7 + $0x18] sm:$0xff]  }
  0xa6   :  { %2141 = vmatpush1.bf16.msra.mxu1 %v2450_v49 }
  0xa7   :  { %1348 = vmatpush1.bf16.msra.mxu0 %v2450_v49  ;;  %2126 = vmatprep.subr.bf16.mxu1 %v2461_v50  ;;  %v2541_v49 = vld [vmem:[#allocation7 + $0x60] sm:$0xff]  }
  0xa8   :  { %1349 = vmatprep.subr.bf16.mxu0 %v2461_v50  ;;  %v2542_v50 = vld [vmem:[#allocation7 + $0x20] sm:$0xff]  }
  0xa9   :  { %1192 = vmatmul.mubr.bf16.gmra.mrb[24].mxu1 %v2457_v51  ;;  %v2543_v51 = vld [vmem:[#allocation7 + $0x68] sm:$0xff]  }
  0xaa   :  { %1305 = vmatmul.mubr.bf16.gmra.mrb[24].mxu0 %v2458_v52  ;;  %2142 = vmatpush1.bf16.msra.mxu1 %v2459_v53  ;;  %v2544_v52 = vld [vmem:[#allocation7 + $0x28] sm:$0xff]  }
  0xab   :  { %1350 = vmatpush1.bf16.msra.mxu0 %v2459_v53  ;;  %2127 = vmatprep.subr.bf16.mxu1 %v2464_v54  ;;  %v2545_v53 = vld [vmem:[#allocation7 + $0x70] sm:$0xff]  }
  0xac   :  { %1351 = vmatprep.subr.bf16.mxu0 %v2464_v54  ;;  %1201 = vmatprep.mubr.bf16.mxu1 %v2465_v56  ;;  %v2546_v54 = vld [vmem:[#allocation7 + $0x30] sm:$0xff]   ;;  %v2548_v56 = vld [vmem:[#allocation7 + $0x38] sm:$0xff]  }
  0xad   :  { %1314 = vmatprep.mubr.bf16.mxu0 %v2467_v57 }
  0xae   :  { %2143 = vmatpush1.bf16.msra.mxu1 %v2462_v55 }
  0xaf   :  { %1352 = vmatpush1.bf16.msra.mxu0 %v2462_v55  ;;  %2128 = vmatprep.subr.bf16.mxu1 %v2473_v58  ;;  %v2547_v55 = vld [vmem:[#allocation7 + $0x78] sm:$0xff]  }
  0xb0   :  { %1353 = vmatprep.subr.bf16.mxu0 %v2473_v58 }
  0xb1   :  { %1202 = vmatmul.mubr.bf16.gmra.mrb[28].mxu1 %v2469_v59 }
  0xb2   :  { %1315 = vmatmul.mubr.bf16.gmra.mrb[28].mxu0 %v2470_v60  ;;  %2144 = vmatpush1.bf16.msra.mxu1 %v2471_v61 }
  0xb3   :  { %1354 = vmatpush1.bf16.msra.mxu0 %v2471_v61  ;;  %2129 = vmatprep.subr.bf16.mxu1 %v2476_v62 }
  0xb4   :  { %1355 = vmatprep.subr.bf16.mxu0 %v2476_v62  ;;  %1357 = vmatprep.mubr.bf16.mxu0 %v2479_v63 }
  0xb5   :  { %1397 = vmatprep.mubr.bf16.mxu1 %v2482_v0 }
  0xb6   :  { %2145 = vmatpush1.bf16.msra.mxu1 %v2474_v1 }
  0xb7   :  { %1356 = vmatpush1.bf16.msra.mxu0 %v2474_v1  ;;  %2050 = vmatprep.subr.bf16.mxu1 %v2533_v41 }
  0xb8   :  { %1438 = vmatprep.subr.bf16.mxu0 %v2485_v2  ;;  %v241_v2 = vlaneseq }
  0xb9   :  { %1398 = vmatmul.mubr.bf16.vlgmr.msra.gmra.mrb[32].mxu1 %v2480_v4 }
  0xba   :  { %1358 = vmatmul.mubr.bf16.vlgmr.msra.gmra.mrb[0].mxu0 %v2477_v3  ;;  %1407 = vmatprep.mubr.bf16.mxu1 %v2491_v8 }
  0xbb   :  { %1439 = vmatpush1.bf16.msra.mxu0 %v2483_v5  ;;  %1367 = vmatprep.mubr.bf16.mxu0 %v2489_v6  ;;  %v242_v6 = vshrl.u32 %v241_v2, 7 }
  0xbc   :  { %1440 = vmatprep.subr.bf16.mxu0 %v2488_v7  ;;  %2051 = vmatpush3.bf16.msra.mxu1 %v2534_v42 }
  0xbd   :  { %2052 = vmatprep.subr.bf16.mxu1 %v2535_v43  ;;  %v243_v8 = vsub.s32 0, %v242_v6 }
  0xbf   :  { %1441 = vmatpush1.bf16.msra.mxu0 %v2486_v9 }
  0xc0   :  { %1442 = vmatprep.subr.bf16.mxu0 %v2497_v10  ;;  %2053 = vmatpush3.bf16.msra.mxu1 %v2536_v44  ;;  %v239_v10 = vld [vmem:[%s2896_s2] sm:$0x3] }
  0xc1   :  { %1408 = vmatmul.mubr.bf16.gmra.mrb[36].mxu1 %v2494_v12  ;;  %2054 = vmatprep.subr.bf16.mxu1 %v2537_v45 }
  0xc2   :  { %1368 = vmatmul.mubr.bf16.gmra.mrb[4].mxu0 %v2493_v11  ;;  %1417 = vmatprep.mubr.bf16.mxu1 %v2503_v16  ;;  %v247_v11 = vsub.s32 1, %v242_v6 }
  0xc3   :  { %1443 = vmatpush1.bf16.msra.mxu0 %v2495_v13  ;;  %1377 = vmatprep.mubr.bf16.mxu0 %v2501_v14  ;;  %v2758_v14 = vrot.slane %v239_v10, %v243_v8 }
  0xc4   :  { %1444 = vmatprep.subr.bf16.mxu0 %v2500_v15  ;;  %2055 = vmatpush3.bf16.msra.mxu1 %v2538_v46  ;;  %v2760_v15 = vrot.slane %v239_v10, %v247_v11 }
  0xc5   :  { %2056 = vmatprep.subr.bf16.mxu1 %v2539_v47 }
  0xc7   :  { %1445 = vmatpush1.bf16.msra.mxu0 %v2498_v17 }
  0xc8   :  { %1446 = vmatprep.subr.bf16.mxu0 %v2509_v18  ;;  %2057 = vmatpush3.bf16.msra.mxu1 %v2540_v48 }
  0xc9   :  { %1418 = vmatmul.mubr.bf16.gmra.mrb[40].mxu1 %v2506_v20  ;;  %2058 = vmatprep.subr.bf16.mxu1 %v2541_v49 }
  0xca   :  { %1378 = vmatmul.mubr.bf16.gmra.mrb[8].mxu0 %v2505_v19  ;;  %1427 = vmatprep.mubr.bf16.mxu1 %v2515_v24 }
  0xcb   :  { %1447 = vmatpush1.bf16.msra.mxu0 %v2507_v21  ;;  %1387 = vmatprep.mubr.bf16.mxu0 %v2513_v22 }
  0xcc   :  { %1448 = vmatprep.subr.bf16.mxu0 %v2512_v23  ;;  %2059 = vmatpush3.bf16.msra.mxu1 %v2542_v50 }
  0xcd   :  { %2060 = vmatprep.subr.bf16.mxu1 %v2543_v51 }
  0xcf   :  { %1449 = vmatpush1.bf16.msra.mxu0 %v2510_v25 }
  0xd0   :  { %1450 = vmatprep.subr.bf16.mxu0 %v2521_v26  ;;  %2061 = vmatpush3.bf16.msra.mxu1 %v2544_v52 }
  0xd1   :  { %1428 = vmatmul.mubr.bf16.gmra.mrb[44].mxu1 %v2518_v28  ;;  %2062 = vmatprep.subr.bf16.mxu1 %v2545_v53 }
  0xd2   :  { %1388 = vmatmul.mubr.bf16.gmra.mrb[12].mxu0 %v2517_v27 }
  0xd3   :  { %1451 = vmatpush1.bf16.msra.mxu0 %v2519_v29  ;;  %1470 = vmatprep.mubr.bf16.mxu0 %v2652_v32 }
  0xd4   :  { %1452 = vmatprep.subr.bf16.mxu0 %v2524_v30  ;;  %2063 = vmatpush3.bf16.msra.mxu1 %v2546_v54 }
  0xd5   :  { %2064 = vmatprep.subr.bf16.mxu1 %v2547_v55 }
  0xd7   :  { %1453 = vmatpush1.bf16.msra.mxu0 %v2522_v31 }
  0xd8   :  { %2065 = vmatpush3.bf16.msra.mxu1 %v2548_v56 }
  0xda   :  { %1471 = vmatmul.mubr.bf16.vlgmr.msra.gmra.mrb[0].mxu0 %v2525_v33 }
  0xdb   :  { %1480 = vmatprep.mubr.bf16.mxu0 %v2652_v32 }
  0xe2   :  { %1481 = vmatmul.mubr.bf16.gmra.mrb[4].mxu0 %v2526_v34 }
  0xe3   :  { %1490 = vmatprep.mubr.bf16.mxu0 %v2652_v32 }
  0xea   :  { %1491 = vmatmul.mubr.bf16.gmra.mrb[8].mxu0 %v2527_v35 }
  0xeb   :  { %1500 = vmatprep.mubr.bf16.mxu0 %v2652_v32 }
  0xf2   :  { %1501 = vmatmul.mubr.bf16.gmra.mrb[12].mxu0 %v2528_v36 }
  0xf3   :  { %1510 = vmatprep.mubr.bf16.mxu0 %v2652_v32 }
  0xfa   :  { %1511 = vmatmul.mubr.bf16.gmra.mrb[32].mxu0 %v2529_v37 }
  0xfb   :  { %1520 = vmatprep.mubr.bf16.mxu0 %v2652_v32 }
 0x102   :  { %1521 = vmatmul.mubr.bf16.gmra.mrb[36].mxu0 %v2530_v38 }
 0x103   :  { %1530 = vmatprep.mubr.bf16.mxu0 %v2652_v32 }
 0x10a   :  { %1531 = vmatmul.mubr.bf16.gmra.mrb[40].mxu0 %v2531_v39 }
 0x10b   :  { %1540 = vmatprep.mubr.bf16.mxu0 %v2652_v32 }
 0x112   :  { %1541 = vmatmul.mubr.bf16.gmra.mrb[44].mxu0 %v2532_v40 }
 0x14c   :  { %v2723_v57 = vpop.f32.mrb[0].mxu1 }
 0x14d   :  { %v2725_v58 = vpop.f32.mrb[1].mxu1 }
 0x14e   :  { %v2727_v59 = vpop.f32.mrb[2].mxu1 }
 0x14f   :  { %v2729_v60 = vpop.f32.mrb[3].mxu1 }
 0x154   :  { %v2731_v61 = vpop.f32.mrb[4].mxu1 }
 0x155   :  { %v2733_v62 = vpop.f32.mrb[5].mxu1 }
 0x156   :  { %v2735_v63 = vpop.f32.mrb[6].mxu1 }
 0x157   :  { %v2737_v0 = vpop.f32.mrb[7].mxu1 }
 0x15c   :  { %v2739_v1 = vpop.f32.mrb[8].mxu1 }
 0x15d   :  { %v2741_v3 = vpop.f32.mrb[9].mxu1 }
 0x15e   :  { %v2743_v4 = vpop.f32.mrb[10].mxu1 }
 0x15f   :  { %v2745_v5 = vpop.f32.mrb[11].mxu1 }
 0x164   :  { %v2747_v7 = vpop.f32.mrb[12].mxu1 }
 0x165   :  { %v2749_v9 = vpop.f32.mrb[13].mxu1 }
 0x166   :  { %v2754_v12 = vpop.f32.mrb[14].mxu1 }
 0x167   :  { %v2756_v13 = vpop.f32.mrb[15].mxu1 }
 0x16c   :  { %v1173_v16 = vpop.f32.mrb[16].mxu1 }
 0x16d   :  { %v1286_v17 = vpop.f32.mrb[16].mxu0  ;;  %v1174_v18 = vadd.f32 %v1173_v16, %v2758_v14  ;;  %v1175_v19 = vpop.f32.mrb[17].mxu1 }
 0x16e   :  { %v1288_v20 = vpop.f32.mrb[17].mxu0  ;;  %v1176_v21 = vadd.f32 %v1175_v19, %v2760_v15  ;;  %v1177_v22 = vpop.f32.mrb[18].mxu1 }
 0x16f   :  { %v1290_v23 = vpop.f32.mrb[18].mxu0  ;;  %v1287_v24 = vadd.f32 %v1286_v17, %v1174_v18  ;;  %v1178_v25 = vadd.f32 %v1177_v22, %v2758_v14  ;;  %v1179_v26 = vpop.f32.mrb[19].mxu1 }
 0x170   :  { %v1292_v27 = vpop.f32.mrb[19].mxu0  ;;  %v1289_v28 = vadd.f32 %v1288_v20, %v1176_v21  ;;  %v1180_v29 = vadd.f32 %v1179_v26, %v2760_v15 }
 0x171   :  { %v1291_v30 = vadd.f32 %v1290_v23, %v1178_v25 }
 0x172   :  { %v1293_v31 = vadd.f32 %v1292_v27, %v1180_v29 }
 0x174   :  { %v1183_v32 = vpop.f32.mrb[20].mxu1 }
 0x175   :  { %v1296_v33 = vpop.f32.mrb[20].mxu0  ;;  %v1184_v34 = vadd.f32 %v1183_v32, %v2758_v14  ;;  %v1185_v35 = vpop.f32.mrb[21].mxu1 }
 0x176   :  { %v1298_v36 = vpop.f32.mrb[21].mxu0  ;;  %v1186_v37 = vadd.f32 %v1185_v35, %v2760_v15  ;;  %v1187_v38 = vpop.f32.mrb[22].mxu1 }
 0x177   :  { %v1300_v39 = vpop.f32.mrb[22].mxu0  ;;  %v1297_v40 = vadd.f32 %v1296_v33, %v1184_v34  ;;  %v1188_v41 = vadd.f32 %v1187_v38, %v2758_v14  ;;  %v1189_v42 = vpop.f32.mrb[23].mxu1 }
 0x178   :  { %v1302_v43 = vpop.f32.mrb[23].mxu0  ;;  %v1299_v44 = vadd.f32 %v1298_v36, %v1186_v37  ;;  %v1190_v45 = vadd.f32 %v1189_v42, %v2760_v15 }
 0x179   :  { %v1301_v46 = vadd.f32 %v1300_v39, %v1188_v41 }
 0x17a   :  { %v1303_v47 = vadd.f32 %v1302_v43, %v1190_v45 }
 0x17c   :  { %v1193_v48 = vpop.f32.mrb[24].mxu1 }
 0x17d   :  { %v1306_v49 = vpop.f32.mrb[24].mxu0  ;;  %v1194_v50 = vadd.f32 %v1193_v48, %v2758_v14  ;;  %v1195_v51 = vpop.f32.mrb[25].mxu1 }
 0x17e   :  { %v1308_v52 = vpop.f32.mrb[25].mxu0  ;;  %v1196_v53 = vadd.f32 %v1195_v51, %v2760_v15  ;;  %v1197_v54 = vpop.f32.mrb[26].mxu1 }
 0x17f   :  { %v1310_v55 = vpop.f32.mrb[26].mxu0  ;;  %v1307_v56 = vadd.f32 %v1306_v49, %v1194_v50  ;;  %v1198_v2 = vadd.f32 %v1197_v54, %v2758_v14  ;;  %v1199_v6 = vpop.f32.mrb[27].mxu1 }
 0x180   :  { %v1312_v8 = vpop.f32.mrb[27].mxu0  ;;  %v1309_v10 = vadd.f32 %v1308_v52, %v1196_v53  ;;  %v1200_v11 = vadd.f32 %v1199_v6, %v2760_v15 }
 0x181   :  { %v1311_v16 = vadd.f32 %v1310_v55, %v1198_v2 }
 0x182   :  { %v1313_v17 = vadd.f32 %v1312_v8, %v1200_v11 }
 0x184   :  { %v1203_v18 = vpop.f32.mrb[28].mxu1 }
 0x185   :  { %v1316_v19 = vpop.f32.mrb[28].mxu0  ;;  %v1204_v20 = vadd.f32 %v1203_v18, %v2758_v14  ;;  %v1205_v21 = vpop.f32.mrb[29].mxu1 }
 0x186   :  { %v1318_v22 = vpop.f32.mrb[29].mxu0  ;;  %v1206_v23 = vadd.f32 %v1205_v21, %v2760_v15  ;;  %v1207_v25 = vpop.f32.mrb[30].mxu1 }
 0x187   :  { %v1320_v26 = vpop.f32.mrb[30].mxu0  ;;  %v1317_v27 = vadd.f32 %v1316_v19, %v1204_v20  ;;  %v1208_v29 = vadd.f32 %v1207_v25, %v2758_v14  ;;  %v1209_v32 = vpop.f32.mrb[31].mxu1 }
 0x188   :  { %v1322_v33 = vpop.f32.mrb[31].mxu0  ;;  %v1319_v34 = vadd.f32 %v1318_v22, %v1206_v23  ;;  %v1210_v35 = vadd.f32 %v1209_v32, %v2760_v15  ;;  %v1138_v23 = vadd.f32 %v2727_v59, %v2758_v14  ;;  %v1146_v59 = vadd.f32 %v2733_v62, %v2760_v15 }
 0x189   :  { %v1321_v36 = vadd.f32 %v1320_v26, %v1208_v29 }
 0x18a   :  { %v1323_v37 = vadd.f32 %v1322_v33, %v1210_v35 }
 0x18c   :  { %v1399_v38 = vpop.f32.mrb[32].mxu1 }
 0x18d   :  { %v2778_v39 = vadd.f32 %v1399_v38, %v1287_v24  ;;  %v1401_v41 = vpop.f32.mrb[33].mxu1 }
 0x18e   :  { %v2780_v42 = vadd.f32 %v1401_v41, %v1289_v28  ;;  %v1403_v43 = vpop.f32.mrb[34].mxu1 }
 0x18f   :  { %v2782_v45 = vadd.f32 %v1403_v43, %v1291_v30  ;;  %v1405_v48 = vpop.f32.mrb[35].mxu1 }
 0x190   :  { %v2784_v49 = vadd.f32 %v1405_v48, %v1293_v31 }
 0x194   :  { %v1409_v50 = vpop.f32.mrb[36].mxu1 }
 0x195   :  { %v2786_v51 = vadd.f32 %v1409_v50, %v1297_v40  ;;  %v1411_v52 = vpop.f32.mrb[37].mxu1 }
 0x196   :  { %v2788_v53 = vadd.f32 %v1411_v52, %v1299_v44  ;;  %v1413_v54 = vpop.f32.mrb[38].mxu1 }
 0x197   :  { %v2790_v55 = vadd.f32 %v1413_v54, %v1301_v46  ;;  %v1415_v24 = vpop.f32.mrb[39].mxu1  ;;  %v1150_v54 = vadd.f32 %v2737_v0, %v2760_v15 }
 0x198   :  { %v2792_v2 = vadd.f32 %v1415_v24, %v1303_v47 }
 0x19c   :  { %v1419_v28 = vpop.f32.mrb[40].mxu1 }
 0x19d   :  { %v2794_v6 = vadd.f32 %v1419_v28, %v1307_v56  ;;  %v1421_v30 = vpop.f32.mrb[41].mxu1 }
 0x19e   :  { %v2796_v8 = vadd.f32 %v1421_v30, %v1309_v10  ;;  %v1423_v31 = vpop.f32.mrb[42].mxu1  ;;  %v1134_v10 = vadd.f32 %v2723_v57, %v2758_v14 }
 0x19f   :  { %v2798_v11 = vadd.f32 %v1423_v31, %v1311_v16  ;;  %v1425_v40 = vpop.f32.mrb[43].mxu1  ;;  %v1136_v16 = vadd.f32 %v2725_v58, %v2760_v15  ;;  %v1144_v58 = vadd.f32 %v2731_v61, %v2758_v14 }
 0x1a0   :  { %v2800_v18 = vadd.f32 %v1425_v40, %v1313_v17 }
 0x1a4   :  { %v1429_v44 = vpop.f32.mrb[44].mxu1 }
 0x1a5   :  { %v2802_v19 = vadd.f32 %v1429_v44, %v1317_v27  ;;  %v1431_v46 = vpop.f32.mrb[45].mxu1  ;;  %v1140_v27 = vadd.f32 %v2729_v60, %v2760_v15  ;;  %v1148_v60 = vadd.f32 %v2735_v63, %v2758_v14 }
 0x1a6   :  { %v2804_v20 = vadd.f32 %v1431_v46, %v1319_v34  ;;  %v1433_v47 = vpop.f32.mrb[46].mxu1 }
 0x1a7   :  { %v2806_v21 = vadd.f32 %v1433_v47, %v1321_v36  ;;  %v1435_v56 = vpop.f32.mrb[47].mxu1  ;;  %v1154_v47 = vadd.f32 %v2739_v1, %v2758_v14 }
 0x1a8   :  { %v2808_v22 = vadd.f32 %v1435_v56, %v1323_v37  ;;  %v1156_v56 = vadd.f32 %v2741_v3, %v2760_v15 }
 0x1ad   :  { %v1472_v17 = vpop.f32.mrb[0].mxu0 }
 0x1ae   :  { %v2147_v25 = vadd.f32 %v1472_v17, %v1134_v10  ;;  %v1474_v26 = vpop.f32.mrb[1].mxu0 }
 0x1af   :  { %v2149_v29 = vadd.f32 %v1474_v26, %v1136_v16  ;;  %v1476_v32 = vpop.f32.mrb[2].mxu0  ;;  %v1158_v16 = vadd.f32 %v2743_v4, %v2758_v14 }
 0x1b0   :  { %v2151_v33 = vadd.f32 %v1476_v32, %v1138_v23  ;;  %v1478_v34 = vpop.f32.mrb[3].mxu0  ;;  %v1551_v36 = vmax.f32 %v2147_v25, 0.0  ;;  %v1160_v25 = vadd.f32 %v2745_v5, %v2760_v15 }
 0x1b1   :  { %v2153_v35 = vadd.f32 %v1478_v34, %v1140_v27  ;;  %v1552_v57 = vmax.f32 %v2149_v29, 0.0 }
 0x1b2   :  { %v1553_v37 = vmax.f32 %v2151_v33, 0.0 }
 0x1b3   :  { %v1554_v38 = vmax.f32 %v2153_v35, 0.0 }
 0x1b4   :  { %v1583_v41 = vpack.c.bf16 %v1553_v37, %v1551_v36  ;;  %v1164_v36 = vadd.f32 %v2747_v7, %v2758_v14  ;;  %v1166_v37 = vadd.f32 %v2749_v9, %v2760_v15 }
 0x1b5   :  { %v1584_v43 = vpack.c.bf16 %v1554_v38, %v1552_v57  ;;  %v1482_v48 = vpop.f32.mrb[4].mxu0  ;;  %v1168_v38 = vadd.f32 %v2754_v12, %v2758_v14 }
 0x1b6   :  { %v2155_v50 = vadd.f32 %v1482_v48, %v1144_v58  ;;  %v1484_v52 = vpop.f32.mrb[5].mxu0 }
 0x1b7   :  { %v2157_v24 = vadd.f32 %v1484_v52, %v1146_v59  ;;  %v1486_v28 = vpop.f32.mrb[6].mxu0  ;;  %1766 = vmatprep.mubr.bf16.mxu1 %v1584_v43  ;;  %v1170_v59 = vadd.f32 %v2756_v13, %v2760_v15 }
 0x1b8   :  { %v2159_v30 = vadd.f32 %v1486_v28, %v1148_v60  ;;  %v1488_v31 = vpop.f32.mrb[7].mxu0  ;;  %1767 = vmatmul.mubr.bf16.vlgmr.msra.gmra.mrb[48].mxu1 %v1583_v41  ;;  %v1555_v40 = vmax.f32 %v2155_v50, 0.0 }
 0x1b9   :  { %v2161_v61 = vadd.f32 %v1488_v31, %v1150_v54  ;;  %v1556_v62 = vmax.f32 %v2157_v24, 0.0 }
 0x1ba   :  { %v1557_v44 = vmax.f32 %v2159_v30, 0.0 }
 0x1bb   :  { %v1558_v46 = vmax.f32 %v2161_v61, 0.0 }
 0x1bc   :  { %v1585_v63 = vpack.c.bf16 %v1557_v44, %v1555_v40 }
 0x1bd   :  { %v1586_v10 = vpack.c.bf16 %v1558_v46, %v1556_v62  ;;  %v1492_v0 = vpop.f32.mrb[8].mxu0 }
 0x1be   :  { %v2163_v17 = vadd.f32 %v1492_v0, %v1154_v47  ;;  %v1494_v23 = vpop.f32.mrb[9].mxu0 }
 0x1bf   :  { %v2165_v26 = vadd.f32 %v1494_v23, %v1156_v56  ;;  %v1496_v27 = vpop.f32.mrb[10].mxu0  ;;  %1774 = vmatprep.mubr.bf16.mxu1 %v1586_v10 }
 0x1c0   :  { %v2167_v29 = vadd.f32 %v1496_v27, %v1158_v16  ;;  %v1498_v32 = vpop.f32.mrb[11].mxu0  ;;  %1775 = vmatmul.mubr.bf16.gmra.mrb[52].mxu1 %v1585_v63  ;;  %v1559_v33 = vmax.f32 %v2163_v17, 0.0 }
 0x1c1   :  { %v2169_v1 = vadd.f32 %v1498_v32, %v1160_v25  ;;  %v1560_v3 = vmax.f32 %v2165_v26, 0.0 }
 0x1c2   :  { %v1561_v34 = vmax.f32 %v2167_v29, 0.0 }
 0x1c3   :  { %v1562_v35 = vmax.f32 %v2169_v1, 0.0 }
 0x1c4   :  { %v1587_v4 = vpack.c.bf16 %v1561_v34, %v1559_v33 }
 0x1c5   :  { %v1588_v57 = vpack.c.bf16 %v1562_v35, %v1560_v3  ;;  %v1502_v5 = vpop.f32.mrb[12].mxu0 }
 0x1c6   :  { %v2171_v58 = vadd.f32 %v1502_v5, %v1164_v36  ;;  %v1504_v41 = vpop.f32.mrb[13].mxu0 }
 0x1c7   :  { %v2173_v43 = vadd.f32 %v1504_v41, %v1166_v37  ;;  %v1506_v48 = vpop.f32.mrb[14].mxu0  ;;  %1782 = vmatprep.mubr.bf16.mxu1 %v1588_v57 }
 0x1c8   :  { %v2175_v60 = vadd.f32 %v1506_v48, %v1168_v38  ;;  %v1508_v50 = vpop.f32.mrb[15].mxu0  ;;  %1783 = vmatmul.mubr.bf16.gmra.mrb[56].mxu1 %v1587_v4  ;;  %v1563_v52 = vmax.f32 %v2171_v58, 0.0 }
 0x1c9   :  { %v2177_v7 = vadd.f32 %v1508_v50, %v1170_v59  ;;  %v1564_v9 = vmax.f32 %v2173_v43, 0.0 }
 0x1ca   :  { %v1565_v54 = vmax.f32 %v2175_v60, 0.0 }
 0x1cb   :  { %v1566_v24 = vmax.f32 %v2177_v7, 0.0 }
 0x1cc   :  { %v1589_v28 = vpack.c.bf16 %v1565_v54, %v1563_v52 }
 0x1cd   :  { %v1590_v30 = vpack.c.bf16 %v1566_v24, %v1564_v9  ;;  %v1512_v31 = vpop.f32.mrb[32].mxu0 }
 0x1ce   :  { %v1513_v12 = vadd.f32 %v1512_v31, %v2778_v39  ;;  %v1514_v14 = vpop.f32.mrb[33].mxu0 }
 0x1cf   :  { %v1515_v61 = vadd.f32 %v1514_v14, %v2780_v42  ;;  %v1516_v13 = vpop.f32.mrb[34].mxu0  ;;  %1790 = vmatprep.mubr.bf16.mxu1 %v1590_v30 }
 0x1d0   :  { %v1517_v15 = vadd.f32 %v1516_v13, %v2782_v45  ;;  %v1518_v40 = vpop.f32.mrb[35].mxu0  ;;  %1791 = vmatmul.mubr.bf16.gmra.mrb[60].mxu1 %v1589_v28  ;;  %v1567_v62 = vmax.f32 %v1513_v12, 0.0 }
 0x1d1   :  { %v1519_v44 = vadd.f32 %v1518_v40, %v2784_v49  ;;  %v1568_v47 = vmax.f32 %v1515_v61, 0.0 }
 0x1d2   :  { %v1569_v46 = vmax.f32 %v1517_v15, 0.0 }
 0x1d3   :  { %v1570_v63 = vmax.f32 %v1519_v44, 0.0 }
 0x1d4   :  { %v1591_v56 = vpack.c.bf16 %v1569_v46, %v1567_v62 }
 0x1d5   :  { %v1592_v10 = vpack.c.bf16 %v1570_v63, %v1568_v47  ;;  %v1522_v0 = vpop.f32.mrb[36].mxu0 }
 0x1d6   :  { %v1523_v39 = vadd.f32 %v1522_v0, %v2786_v51  ;;  %v1524_v16 = vpop.f32.mrb[37].mxu0 }
 0x1d7   :  { %v1525_v42 = vadd.f32 %v1524_v16, %v2788_v53  ;;  %v1526_v17 = vpop.f32.mrb[38].mxu0  ;;  %1798 = vmatprep.mubr.bf16.mxu1 %v1592_v10 }
 0x1d8   :  { %v1527_v45 = vadd.f32 %v1526_v17, %v2790_v55  ;;  %v1528_v23 = vpop.f32.mrb[39].mxu0  ;;  %1799 = vmatmul.mubr.bf16.gmra.mrb[64].mxu1 %v1591_v56  ;;  %v1571_v25 = vmax.f32 %v1523_v39, 0.0 }
 0x1d9   :  { %v1529_v49 = vadd.f32 %v1528_v23, %v2792_v2  ;;  %v1572_v27 = vmax.f32 %v1525_v42, 0.0 }
 0x1da   :  { %v1573_v26 = vmax.f32 %v1527_v45, 0.0 }
 0x1db   :  { %v1574_v29 = vmax.f32 %v1529_v49, 0.0 }
 0x1dc   :  { %v1593_v32 = vpack.c.bf16 %v1573_v26, %v1571_v25 }
 0x1dd   :  { %v1594_v1 = vpack.c.bf16 %v1574_v29, %v1572_v27  ;;  %v1532_v33 = vpop.f32.mrb[40].mxu0 }
 0x1de   :  { %v1533_v51 = vadd.f32 %v1532_v33, %v2794_v6  ;;  %v1534_v34 = vpop.f32.mrb[41].mxu0 }
 0x1df   :  { %v1535_v53 = vadd.f32 %v1534_v34, %v2796_v8  ;;  %v1536_v3 = vpop.f32.mrb[42].mxu0  ;;  %1806 = vmatprep.mubr.bf16.mxu1 %v1594_v1 }
 0x1e0   :  { %v1537_v55 = vadd.f32 %v1536_v3, %v2798_v11  ;;  %v1538_v35 = vpop.f32.mrb[43].mxu0  ;;  %1807 = vmatmul.mubr.bf16.gmra.mrb[68].mxu1 %v1593_v32  ;;  %v1575_v36 = vmax.f32 %v1533_v51, 0.0 }
 0x1e1   :  { %v1539_v2 = vadd.f32 %v1538_v35, %v2800_v18  ;;  %v1576_v37 = vmax.f32 %v1535_v53, 0.0 }
 0x1e2   :  { %v1577_v4 = vmax.f32 %v1537_v55, 0.0 }
 0x1e3   :  { %v1578_v57 = vmax.f32 %v1539_v2, 0.0 }
 0x1e4   :  { %v1595_v5 = vpack.c.bf16 %v1577_v4, %v1575_v36 }
 0x1e5   :  { %v1596_v38 = vpack.c.bf16 %v1578_v57, %v1576_v37  ;;  %v1542_v58 = vpop.f32.mrb[44].mxu0 }
 0x1e6   :  { %v1543_v6 = vadd.f32 %v1542_v58, %v2802_v19  ;;  %v1544_v41 = vpop.f32.mrb[45].mxu0 }
 0x1e7   :  { %v1545_v8 = vadd.f32 %v1544_v41, %v2804_v20  ;;  %v1546_v59 = vpop.f32.mrb[46].mxu0  ;;  %1814 = vmatprep.mubr.bf16.mxu1 %v1596_v38  ;;  %v2861_v20 = vld [vmem:[%s2898_s4] ss:$0 sm:$0xff]  ;;  %s2653_s4 = smov [#allocation8]  }
 0x1e8   :  { %v1547_v11 = vadd.f32 %v1546_v59, %v2806_v21  ;;  %v1548_v43 = vpop.f32.mrb[47].mxu0  ;;  %1815 = vmatmul.mubr.bf16.gmra.mrb[72].mxu1 %v1595_v5  ;;  %v1579_v48 = vmax.f32 %v1543_v6, 0.0  ;;  %s1852_s12 = sshll.u32 %s2653_s4, 4  ;;  %s1853_s12 = int_to_ptr.vmem [resolvable:$true] %s1852_s12 }
 0x1e9   :  { %v1549_v18 = vadd.f32 %v1548_v43, %v2808_v22  ;;  %v1580_v50 = vmax.f32 %v1545_v8, 0.0  ;;  %s2615_s13 = scalar_lea.vmem %s1853_s12, 2048  ;;  %p2620_p11 = scmp.lt.s32.totalorder %s1853_s12, %s1853_s12 }
 0x1ea   :  { %v1581_v60 = vmax.f32 %v1547_v11, 0.0  ;;  %p2616_p10 = scmp.ne.s32.totalorder %s1853_s12, %s2615_s13  ;;  %p2621_p12 = scmp.lt.s32.totalorder %s2615_s13, %s2615_s13 }
 0x1eb   :  { %v1582_v7 = vmax.f32 %v1549_v18, 0.0 }
 0x1ec   :  { %v1597_v52 = vpack.c.bf16 %v1581_v60, %v1579_v48  ;;  %p2622_p13 = por %p2621_p12, %p2620_p11 }
 0x1ed   :  { %v1598_v54 = vpack.c.bf16 %v1582_v7, %v1580_v50 }
 0x1ee   :  { %p2623_p0 = pnand %p2622_p13, %p2616_p10 }
 0x1ef   :  { %1822 = vmatprep.mubr.bf16.mxu1 %v1598_v54 }
 0x1f0   :  { %1823 = vmatmul.mubr.bf16.gmra.mrb[76].mxu1 %v1597_v52 }
 0x28b   :  { %v2066_v19 = vpop.f32.mrb[48].mxu1 }
 0x28c   :  { %v2067_v9 = vpop.f32.mrb[49].mxu1 }
 0x28d   :  { %v2068_v21 = vadd.f32 %v2067_v9, %v2066_v19  ;;  %v2069_v24 = vpop.f32.mrb[50].mxu1 }
 0x28e   :  { %v2070_v28 = vpop.f32.mrb[51].mxu1 }
 0x28f   :  { %v1769_v22 = vadd.f32 %v2068_v21, %v2861_v20  ;;  %v2071_v30 = vadd.f32 %v2070_v28, %v2069_v24 }
 0x291   :  { %1831 = vst [vmem:[#allocation8] sm:$0xff] %v1769_v22  ;;  %v1772_v31 = vadd.f32 %v2071_v30, %v2861_v20 }
 0x293   :  { %1832 = vst [vmem:[#allocation8 + $0x8] sm:$0xff] %v1772_v31  ;;  %v2072_v12 = vpop.f32.mrb[52].mxu1 }
 0x294   :  { %v2073_v14 = vpop.f32.mrb[53].mxu1 }
 0x295   :  { %v2074_v61 = vadd.f32 %v2073_v14, %v2072_v12  ;;  %v2075_v13 = vpop.f32.mrb[54].mxu1 }
 0x296   :  { %v2076_v15 = vpop.f32.mrb[55].mxu1 }
 0x297   :  { %v1777_v40 = vadd.f32 %v2074_v61, %v2861_v20  ;;  %v2077_v44 = vadd.f32 %v2076_v15, %v2075_v13 }
 0x299   :  { %1833 = vst [vmem:[#allocation8 + $0x10] sm:$0xff] %v1777_v40  ;;  %v1780_v62 = vadd.f32 %v2077_v44, %v2861_v20 }
 0x29b   :  { %1834 = vst [vmem:[#allocation8 + $0x18] sm:$0xff] %v1780_v62  ;;  %v2078_v46 = vpop.f32.mrb[56].mxu1 }
 0x29c   :  { %v2079_v47 = vpop.f32.mrb[57].mxu1 }
 0x29d   :  { %v2080_v63 = vadd.f32 %v2079_v47, %v2078_v46  ;;  %v2081_v56 = vpop.f32.mrb[58].mxu1 }
 0x29e   :  { %v2082_v10 = vpop.f32.mrb[59].mxu1 }
 0x29f   :  { %v1785_v0 = vadd.f32 %v2080_v63, %v2861_v20  ;;  %v2083_v39 = vadd.f32 %v2082_v10, %v2081_v56 }
 0x2a1   :  { %1835 = vst [vmem:[#allocation8 + $0x20] sm:$0xff] %v1785_v0  ;;  %v1788_v16 = vadd.f32 %v2083_v39, %v2861_v20 }
 0x2a3   :  { %1836 = vst [vmem:[#allocation8 + $0x28] sm:$0xff] %v1788_v16  ;;  %v2084_v42 = vpop.f32.mrb[60].mxu1 }
 0x2a4   :  { %v2085_v17 = vpop.f32.mrb[61].mxu1 }
 0x2a5   :  { %v2086_v45 = vadd.f32 %v2085_v17, %v2084_v42  ;;  %v2087_v23 = vpop.f32.mrb[62].mxu1 }
 0x2a6   :  { %v2088_v49 = vpop.f32.mrb[63].mxu1 }
 0x2a7   :  { %v1793_v25 = vadd.f32 %v2086_v45, %v2861_v20  ;;  %v2089_v26 = vadd.f32 %v2088_v49, %v2087_v23 }
 0x2a9   :  { %1837 = vst [vmem:[#allocation8 + $0x30] sm:$0xff] %v1793_v25  ;;  %v1796_v27 = vadd.f32 %v2089_v26, %v2861_v20 }
 0x2ab   :  { %1838 = vst [vmem:[#allocation8 + $0x38] sm:$0xff] %v1796_v27  ;;  %v2090_v29 = vpop.f32.mrb[64].mxu1 }
 0x2ac   :  { %v2091_v32 = vpop.f32.mrb[65].mxu1 }
 0x2ad   :  { %v2092_v1 = vadd.f32 %v2091_v32, %v2090_v29  ;;  %v2093_v33 = vpop.f32.mrb[66].mxu1 }
 0x2ae   :  { %v2094_v51 = vpop.f32.mrb[67].mxu1 }
 0x2af   :  { %v1801_v34 = vadd.f32 %v2092_v1, %v2861_v20  ;;  %v2095_v53 = vadd.f32 %v2094_v51, %v2093_v33 }
 0x2b1   :  { %1839 = vst [vmem:[#allocation8 + $0x40] sm:$0xff] %v1801_v34  ;;  %v1804_v3 = vadd.f32 %v2095_v53, %v2861_v20 }
 0x2b3   :  { %1840 = vst [vmem:[#allocation8 + $0x48] sm:$0xff] %v1804_v3  ;;  %v2096_v55 = vpop.f32.mrb[68].mxu1 }
 0x2b4   :  { %v2097_v35 = vpop.f32.mrb[69].mxu1 }
 0x2b5   :  { %v2098_v2 = vadd.f32 %v2097_v35, %v2096_v55  ;;  %v2099_v36 = vpop.f32.mrb[70].mxu1 }
 0x2b6   :  { %v2100_v4 = vpop.f32.mrb[71].mxu1 }
 0x2b7   :  { %v1809_v37 = vadd.f32 %v2098_v2, %v2861_v20  ;;  %v2101_v57 = vadd.f32 %v2100_v4, %v2099_v36 }
 0x2b9   :  { %1841 = vst [vmem:[#allocation8 + $0x50] sm:$0xff] %v1809_v37  ;;  %v1812_v5 = vadd.f32 %v2101_v57, %v2861_v20 }
 0x2bb   :  { %1842 = vst [vmem:[#allocation8 + $0x58] sm:$0xff] %v1812_v5  ;;  %v2102_v38 = vpop.f32.mrb[72].mxu1 }
 0x2bc   :  { %v2103_v58 = vpop.f32.mrb[73].mxu1 }
 0x2bd   :  { %v2104_v6 = vadd.f32 %v2103_v58, %v2102_v38  ;;  %v2105_v41 = vpop.f32.mrb[74].mxu1 }
 0x2be   :  { %v2106_v8 = vpop.f32.mrb[75].mxu1 }
 0x2bf   :  { %v1817_v59 = vadd.f32 %v2104_v6, %v2861_v20  ;;  %v2107_v11 = vadd.f32 %v2106_v8, %v2105_v41 }
 0x2c1   :  { %1843 = vst [vmem:[#allocation8 + $0x60] sm:$0xff] %v1817_v59  ;;  %v1820_v43 = vadd.f32 %v2107_v11, %v2861_v20 }
 0x2c3   :  { %1844 = vst [vmem:[#allocation8 + $0x68] sm:$0xff] %v1820_v43  ;;  %v2108_v18 = vpop.f32.mrb[76].mxu1 }
 0x2c4   :  { %v2109_v48 = vpop.f32.mrb[77].mxu1 }
 0x2c5   :  { %v2110_v60 = vadd.f32 %v2109_v48, %v2108_v18  ;;  %v2111_v50 = vpop.f32.mrb[78].mxu1 }
 0x2c6   :  { %v2112_v7 = vpop.f32.mrb[79].mxu1 }
 0x2c7   :  { %v1825_v52 = vadd.f32 %v2110_v60, %v2861_v20  ;;  %v2113_v54 = vadd.f32 %v2112_v7, %v2111_v50 }
 0x2c9   :  { %1845 = vst [vmem:[#allocation8 + $0x70] sm:$0xff] %v1825_v52  ;;  %v1828_v19 = vadd.f32 %v2113_v54, %v2861_v20 }
 0x2cb   :  { %1846 = vst [vmem:[#allocation8 + $0x78] sm:$0xff] %v1828_v19 }
 0x2cc   :  { %2626 = shalt.err (!%p2623_p0)
}
 0x2cd   :  { %s2627_s16 = scalar_lea.hbm %s2899_s5, 2048 }
 0x2ce   :  { %p2628_p1 = scmp.ne.s32.totalorder %s2899_s5, %s2627_s16  ;;  %p2631_p2 = scmp.lt.u32.totalorder %s2627_s16, %s2899_s5 }
 0x2d0   :  { %p2633_p3 = pnand %p2631_p2, %p2628_p1 }
 0x2d2   :  { %2636 = shalt.err (!%p2633_p3)
}
 0x2d3   :  { %1858 = dma.vmem_to_hbm [thread:$0]  %s1853_s12, 2048, %s2899_s5, [#allocation4], %s2644_s28, %s2644_s28, %s2645_s29  }
 0x2d4   :  { %2641 = dma.done.wait [#allocation4], 2048  }
 0x2d5   :  { %2642 = vsyncadd [#allocation4], 4294965248 }
 0x2d6   :  { %1862 = vsyncpa [#allocation3], 1 }
 0x2d7   :  { %1863 = vsyncpa [#allocation6], 1 }
 0x2d8   :  { %1864 = vsyncpa [#allocation4], 1 }

</bundles_post_ra>
